<compile_context>
chip_gen: v7x
topology: tpu7x:2x2x1
jax: 0.10.0
libtpu: 0.0.40
codegen_flags: <defaults>
</compile_context>

<pallas_src>
import functools

import jax
import jax.numpy as jnp
import numpy as np
from jax.experimental import pallas as pl
from jax.experimental.pallas import tpu as pltpu


def _generator_kernel(z_ref, w_ref, b_ref, th_ref, o_ref, *, activation):
    """One batch tile.

    z_ref : (d, tB)     latent, batch on lanes
    w_ref : (n*Ng, d)   flattened generator weights (grid-resident)
    b_ref : (n*Ng, 1)   flattened bias, f32, broadcasts over lanes
    th_ref: (n, n*Ng)   block-diagonal theta mixing matrix (grid-resident)
    o_ref : (n, tB)     out^T, batch on lanes (lane-dense stores)
    """
    # h[j*Ng+g, b] = b[j,g] + sum_k W[j,g,k] * z[k,b]   (MXU, f32 accumulate)
    h = jnp.dot(w_ref[...], z_ref[...], preferred_element_type=jnp.float32)
    h = h + b_ref[...]                       # f32 bias add (lane broadcast)
    if activation == "tanh":
        h = jnp.tanh(h)
    else:  # sigmoid as a single tanh EUP push: sigmoid(x) = 0.5*(tanh(x/2)+1)
        h = 0.5 * (jnp.tanh(0.5 * h) + 1.0)
    # out^T[j, b] = sum_g theta[g] * h[j*Ng+g, b]   (block-diagonal theta matmul)
    o_ref[...] = jnp.dot(
        th_ref[...], h.astype(th_ref.dtype), preferred_element_type=jnp.float32
    )


def _pick_block_b(B):
    """Largest lane-aligned batch tile up to 512 rows-of-lanes (re-derive per gen if huge)."""
    if B <= 128:
        return B
    return min(512, (B // 128) * 128)


def generator_forward(z, theta, W, b, activation="tanh", *,
                      block_b=None, mxu_dtype=jnp.bfloat16):
    """z: (d, B) float32 -> out: (B, n) float32 (matches torch Generator.forward)."""
    if activation not in ("tanh", "sigmoid"):
        raise ValueError("Activation should be either sigmoid or tanh")
    n, Ng, d = W.shape
    assert z.shape[0] == d
    B = z.shape[1]

    if block_b is None:
        block_b = _pick_block_b(B)
    assert block_b == B or block_b % 128 == 0, "batch tile must be lane-aligned"
    num_b_blocks = pl.cdiv(B, block_b)

    # Parameter plumbing only (no per-batch compute hoisted out of the kernel).
    op_dtype = jnp.dtype(mxu_dtype)
    z_in = z.astype(op_dtype)                                  # (d, B)    lane-dense
    W_flat = W.reshape(n * Ng, d).astype(op_dtype)             # (n*Ng, d)
    b_flat = b.reshape(n * Ng, 1).astype(jnp.float32)          # (n*Ng, 1) f32 bias
    # Block-diagonal theta: Th[j, i*Ng+g] = theta[0, g] * (i == j)
    # TODO(synk): if n*Ng scales up, replace the dense kron with an elementwise
    # theta-scale + Ng reduction to avoid n-fold redundant MACs / VMEM residency.
    Th = jnp.kron(jnp.eye(n, dtype=jnp.float32),
                  theta.astype(jnp.float32)).astype(op_dtype)  # (n, n*Ng)

    kernel = functools.partial(_generator_kernel, activation=activation)

    itemsize = int(op_dtype.itemsize)
    cost = pl.CostEstimate(
        flops=2 * B * n * Ng * d + 2 * B * n * n * Ng,
        transcendentals=B * n * Ng,
        bytes_accessed=(z_in.size * itemsize + W_flat.size * itemsize
                        + b_flat.size * 4 + Th.size * itemsize + B * n * 4),
    )

    out_t = pl.pallas_call(
        kernel,
        out_shape=jax.ShapeDtypeStruct((n, B), jnp.float32),
        grid=(num_b_blocks,),
        in_specs=[
            pl.BlockSpec((d, block_b), lambda i: (0, i)),   # z tile (pipelined)
            pl.BlockSpec((n * Ng, d), lambda i: (0, 0)),    # W_flat resident
            pl.BlockSpec((n * Ng, 1), lambda i: (0, 0)),    # bias resident
            pl.BlockSpec((n, n * Ng), lambda i: (0, 0)),    # Th resident
        ],
        out_specs=pl.BlockSpec((n, block_b), lambda i: (0, i)),
        compiler_params=pltpu.CompilerParams(
            dimension_semantics=("parallel",),  # pure data-parallel batch axis (v7x megacore)
        ),
        cost_estimate=cost,
    )(z_in, W_flat, b_flat, Th)

    return out_t.T  # (B, n), as the PyTorch forward returns


def init_generator_params(key, n, Ng, d,
                          scale_theta=0.1, scale_G_W=1.0, scale_G_b=1.0):
    """Deterministic parameter init mirroring Generator.__init__."""
    k1, k2, k3 = jax.random.split(key, 3)
    theta = scale_theta * jax.random.normal(k1, (1, Ng), dtype=jnp.float32)
    W = scale_G_W * jax.random.normal(k2, (n, Ng, d), dtype=jnp.float32)
    b = scale_G_b * jax.random.normal(k3, (n, Ng, 1), dtype=jnp.float32)
    # W[:, -1, :] = 0 ; b[:, -1, -1] = [50, 0, ..., 0]
    W = W.at[:, -1, :].set(0.0)
    b = b.at[:, -1, -1].set(jnp.asarray([50.0] + [0.0] * (n - 1), dtype=jnp.float32))
    # W[:, -2, :] = 0 ; b[:, -2, -1] = [0, 50, 0, ..., 0]
    W = W.at[:, -2, :].set(0.0)
    b = b.at[:, -2, -1].set(jnp.asarray([0.0, 50.0] + [0.0] * (n - 2), dtype=jnp.float32))
    return theta, W, b


def generator_ref(z, theta, W, b, activation="tanh"):
    """Pure-JAX reference with the exact PyTorch semantics (f32 throughout)."""
    h = jnp.einsum("ngd,db->ngb", W, z) + b              # (n, Ng, B)
    h = jnp.tanh(h) if activation == "tanh" else jax.nn.sigmoid(h)
    out = jnp.einsum("og,ngb->nob", theta, h)[:, 0, :]   # squeeze(dim=1) -> (n, B)
    return out.T                                         # (B, n)


if __name__ == "__main__":
    # Small shapes consistent with the module: data_dim n, Ng generators,
    # latent_dim d, batch_size B (n >= 2, Ng >= 2 required by __init__).
    n, Ng, d, B = 8, 16, 8, 256

    key = jax.random.PRNGKey(0)
    k_params, k_z = jax.random.split(key)
    theta, W, b = init_generator_params(k_params, n, Ng, d)

    # PyTorch forward takes z of shape (d, batch_size).
    z = jax.random.normal(k_z, (d, B), dtype=jnp.float32)

    ref_tanh = jax.block_until_ready(generator_ref(z, theta, W, b, "tanh"))
    ref_sig = jax.block_until_ready(generator_ref(z, theta, W, b, "sigmoid"))

    # f32 MXU operands -- tight tolerance vs the f32 reference (block_b=128 -> grid=(2,)).
    out_f32 = jax.block_until_ready(
        generator_forward(z, theta, W, b, "tanh", block_b=128, mxu_dtype=jnp.float32))
    assert out_f32.shape == (B, n)
    np.testing.assert_allclose(np.asarray(out_f32), np.asarray(ref_tanh),
                               rtol=1e-4, atol=1e-4)

    # Sigmoid path (single-tanh formulation), f32 operands.
    out_sig = jax.block_until_ready(
        generator_forward(z, theta, W, b, "sigmoid", block_b=128, mxu_dtype=jnp.float32))
    np.testing.assert_allclose(np.asarray(out_sig), np.asarray(ref_sig),
                               rtol=1e-4, atol=1e-4)

    # Default bf16 MXU operands (v6e/v7x fast path), f32 accumulate/activation;
    # tolerance sized for bf16 input rounding (~1e-2 absolute at these scales).
    out_bf16 = jax.block_until_ready(
        generator_forward(z, theta, W, b, "tanh", block_b=128))
    np.testing.assert_allclose(np.asarray(out_bf16), np.asarray(ref_tanh),
                               rtol=5e-2, atol=5e-2)

    print("KERNEL_OK")
</pallas_src>

<mosaic_0001>
module attributes {stable_mosaic.version = 11 : i64} {
  func.func @_generator_kernel(%arg0: i32, %arg1: memref<8x128xf32, #tpu.memory_space<vmem>>, %arg2: memref<128x8xf32, #tpu.memory_space<vmem>>, %arg3: memref<128x1xf32, #tpu.memory_space<vmem>>, %arg4: memref<8x128xf32, #tpu.memory_space<vmem>>, %arg5: memref<8x128xf32, #tpu.memory_space<vmem>>) attributes {dimension_semantics = [#tpu.dimension_semantics<parallel>], iteration_bounds = array<i64: 2>, scalar_prefetch = 0 : i64, scratch_operands = 0 : i64, tpu.core_type = #tpu.core_type<tc>, window_params = [{transform_indices = @transform_0, window_bounds = array<i64: 8, 128>}, {pipeline_mode = #tpu.pipeline_mode<synchronous>, transform_indices = @transform_1, window_bounds = array<i64: 128, 8>}, {pipeline_mode = #tpu.pipeline_mode<synchronous>, transform_indices = @transform_2, window_bounds = array<i64: 128, 1>}, {pipeline_mode = #tpu.pipeline_mode<synchronous>, transform_indices = @transform_3, window_bounds = array<i64: 8, 128>}, {transform_indices = @transform_4, window_bounds = array<i64: 8, 128>}]} {
    %c0 = arith.constant 0 : index
    %c0_0 = arith.constant 0 : index
    %0 = vector.load %arg2[%c0, %c0_0] : memref<128x8xf32, #tpu.memory_space<vmem>>, vector<128x8xf32>
    %c0_1 = arith.constant 0 : index
    %c0_2 = arith.constant 0 : index
    %1 = vector.load %arg1[%c0_1, %c0_2] : memref<8x128xf32, #tpu.memory_space<vmem>>, vector<8x128xf32>
    %cst = arith.constant dense<0.000000e+00> : vector<128x128xf32>
    %2 = tpu.matmul %0, %1, %cst {dimension_numbers = #tpu.dot_dimension_numbers<[1], [0], [0], [1], [0, 0, 1, 1], [], []>} : vector<128x8xf32>, vector<8x128xf32>, vector<128x128xf32> -> vector<128x128xf32>
    %c0_3 = arith.constant 0 : index
    %c0_4 = arith.constant 0 : index
    %3 = vector.load %arg3[%c0_3, %c0_4] : memref<128x1xf32, #tpu.memory_space<vmem>>, vector<128x1xf32>
    %4 = vector.broadcast %3 : vector<128x1xf32> to vector<128x128xf32>
    %5 = arith.addf %2, %4 : vector<128x128xf32>
    %6 = math.tanh %5 : vector<128x128xf32>
    %c0_5 = arith.constant 0 : index
    %c0_6 = arith.constant 0 : index
    %7 = vector.load %arg4[%c0_5, %c0_6] : memref<8x128xf32, #tpu.memory_space<vmem>>, vector<8x128xf32>
    %cst_7 = arith.constant dense<0.000000e+00> : vector<8x128xf32>
    %8 = tpu.matmul %7, %6, %cst_7 {dimension_numbers = #tpu.dot_dimension_numbers<[1], [0], [0], [1], [0, 0, 1, 1], [], []>} : vector<8x128xf32>, vector<128x128xf32>, vector<8x128xf32> -> vector<8x128xf32>
    %c0_8 = arith.constant 0 : index
    %c0_9 = arith.constant 0 : index
    %9 = vector.load %arg5[%c0_8, %c0_9] : memref<8x128xf32, #tpu.memory_space<vmem>>, vector<8x128xf32>
    tpu.vector_store %arg5[%c0_8, %c0_9], %8 {strides = array<i32>} : memref<8x128xf32, #tpu.memory_space<vmem>>, vector<8x128xf32>,
    return
  }
  func.func @transform_0(%arg0: i32) -> (i32, i32) {
    %c0_i32 = arith.constant 0 : i32
    %c0_i32_0 = arith.constant 0 : i32
    return %c0_i32, %arg0 : i32, i32
  }
  func.func @transform_1(%arg0: i32) -> (i32, i32) {
    %c0_i32 = arith.constant 0 : i32
    %c0_i32_0 = arith.constant 0 : i32
    %c0_i32_1 = arith.constant 0 : i32
    return %c0_i32, %c0_i32_0 : i32, i32
  }
  func.func @transform_2(%arg0: i32) -> (i32, i32) {
    %c0_i32 = arith.constant 0 : i32
    %c0_i32_0 = arith.constant 0 : i32
    %c0_i32_1 = arith.constant 0 : i32
    return %c0_i32, %c0_i32_0 : i32, i32
  }
  func.func @transform_3(%arg0: i32) -> (i32, i32) {
    %c0_i32 = arith.constant 0 : i32
    %c0_i32_0 = arith.constant 0 : i32
    %c0_i32_1 = arith.constant 0 : i32
    return %c0_i32, %c0_i32_0 : i32, i32
  }
  func.func @transform_4(%arg0: i32) -> (i32, i32) {
    %c0_i32 = arith.constant 0 : i32
    %c0_i32_0 = arith.constant 0 : i32
    return %c0_i32, %arg0 : i32, i32
  }
}

</mosaic_0001>

<bundles_post_ra>
// kernel: tpu_custom_call.1
= control target key start
LH: loop header
LB: loop body
LE: loop exit
PB: predicated region body
PF: predicated region fallthrough
CT: control target
= control target key end

     0   :  { %9 = vsyncpa [#allocation3], 0  ;;  %s1200_s0 = inlined_call_operand.vmem [shape: f32[8,256], index: 0, kind: input, shape index: {}]   ;;  %s1201_s1 = inlined_call_operand.vmem [shape: f32[128,8], index: 1, kind: input, shape index: {}]   ;;  %s1202_s2 = inlined_call_operand.vmem [shape: f32[128,1], index: 2, kind: input, shape index: {}]   ;;  %s1203_s3 = inlined_call_operand.vmem [shape: f32[8,128], index: 3, kind: input, shape index: {}]   ;;  %s1204_s4 = inlined_call_operand.hbm [shape: f32[8,256], index: 4, kind: output, shape index: {}]  }
   0x1   :  { %11 = vsyncpa [#allocation3 + $0x1], 0  ;;  %s977_s15 = smov 0   ;;  %s979_s16 = smov 0  }
   0x2   :  { %s981_s17 = smov 0   ;;  %s983_s18 = smov 0  }
   0x3 LB: > { %s998_s19 = sadd.s32 4294967295, %s945_s18   ;;  %s661_s20 = sadd.s32 4294967294, %s945_s18   ;;  %s945_s18 = sphi %s983_s18, %s1210_s18   ;;  %s941_s17 = sphi %s981_s17, %s1209_s17   ;;  %s937_s16 = sphi %s979_s16, %s1208_s16   ;;  %s933_s15 = sphi %s977_s15, %s1207_s15  }
   0x4   : > { %s1002_s21 = sadd.s32 1, %s945_s18   ;;  %s113_s22 = sadd.s32 1, %s941_s17 }
   0x5   : > { %s110_s23 = ssub.s32 %s945_s18, %s1002_s21  ;;  %p123_p0 = scmp.ne.s32.totalorder %s941_s17, %s937_s16 }
   0x6   : > { %p111_p1 = scmp.eq.s32.totalorder %s110_s23, 0  ;;  %p124_p2 = scmp.eq.s32.totalorder %s998_s19, 1 }
   0x7   : > { %p129_p3 = scmp.ne.s32.totalorder %s937_s16, %s933_s15  ;;  %p130_p4 = scmp.eq.s32.totalorder %s661_s20, 1 }
   0x8   : > { %s1013_s24 = scalar_select %p111_p1, %s941_s17, %s113_s22  }
   0x9   : > { %p1015_p5 = por %p124_p2, %p123_p0  ;;  %p1019_p6 = por %p130_p4, %p129_p3 }
   0xa   : > { %p664_p7 = scmp.ge.s32.totalorder %s945_s18, 1  ;;  %p164_p8 = scmp.lt.s32.totalorder %s945_s18, 3 }
   0xc   : > { %p165_p9 = pnand %p664_p7, %p164_p8 }
   0xd   : > { %p189_p10 = scmp.lt.s32.totalorder (!%p165_p9), %s998_s19, 1  ;;  %v193_v0 = vld [vmem:[%s1201_s1] sm:$0xff] (!%p165_p9)  ;;  %vm306_vm0 = vcmask (!%p165_p9), 64512   ;;  %v947_v1 = vmov (!%p165_p9), 0   ;;  %v212_v3 = vld [vmem:[%s1202_s2 + $0x10] sm:$0xff] (!%p165_p9)  ;;  %v194_v5 = vld [vmem:[%s1201_s1 + $0x8] sm:$0xff] (!%p165_p9) }
   0xe   : > { %168 = sbr.rel (%p165_p9) target bundleno = 513 (0x201), region = 36  ;;  %723 = vmatprep.mubr.msk.f32.mxu0 (!%p165_p9), %vm306_vm0, %v193_v0  ;;  %849 = vset.pattern.permute.xlu0 (!%p165_p9), %v947_v1  ;;  %v210_v2 = vld [vmem:[%s1202_s2] sm:$0xff] (!%p165_p9)  ;;  %v195_v6 = vld [vmem:[%s1201_s1 + $0x10] sm:$0xff] (!%p165_p9)  ;;  %v211_v7 = vld [vmem:[%s1202_s2 + $0x8] sm:$0xff] (!%p165_p9)  ;;  %v948_v34 = vmov (!%p165_p9), 0.0|0.0   ;;  %vm949_vm1 = vmmov (!%p165_p9), 0  }
   0xf   : > { %850 = vset.pattern.permute.xlu1 (!%p165_p9), %v947_v1  ;;  %228 = vperm.xlu0 (!%p165_p9), %849, %v210_v2   ;;  %v213_v8 = vld [vmem:[%s1202_s2 + $0x18] sm:$0xff] (!%p165_p9)  ;;  %v197_v10 = vld [vmem:[%s1201_s1 + $0x20] sm:$0xff] (!%p165_p9)  ;;  %v215_v12 = vld [vmem:[%s1202_s2 + $0x28] sm:$0xff] (!%p165_p9)  ;;  %v950_v35 = vmov (!%p165_p9), 0.0   ;;  %s684_s8 = sshll.u32 (!%p165_p9), %s998_s19, 7 }
  0x10   : > { %238 = vperm.xlu1 (!%p165_p9), %850, %v212_v3   ;;  %v196_v9 = vld [vmem:[%s1201_s1 + $0x18] sm:$0xff] (!%p165_p9)  ;;  %v214_v11 = vld [vmem:[%s1202_s2 + $0x20] sm:$0xff] (!%p165_p9)  ;;  %v198_v13 = vld [vmem:[%s1201_s1 + $0x28] sm:$0xff] (!%p165_p9)  ;;  %782 = vmatprep.subr.bf16.mxu1 (!%p165_p9), %v948_v34  ;;  %s1160_s11 = scalar_lea.hbm (!%p165_p9), %s1204_s4, %s684_s8 }
  0x11   : > { %v199_v14 = vld [vmem:[%s1201_s1 + $0x30] sm:$0xff] (!%p165_p9)  ;;  %v217_v16 = vld [vmem:[%s1202_s2 + $0x38] sm:$0xff] (!%p165_p9)  ;;  %v201_v18 = vld [vmem:[%s1201_s1 + $0x40] sm:$0xff] (!%p165_p9)  ;;  %779 = vmatprep.mubr.msk.f32.mxu1 (!%p165_p9), %vm949_vm1, %v950_v35 }
  0x12   : > { %v216_v15 = vld [vmem:[%s1202_s2 + $0x30] sm:$0xff] (!%p165_p9)  ;;  %v200_v17 = vld [vmem:[%s1201_s1 + $0x38] sm:$0xff] (!%p165_p9)  ;;  %v218_v19 = vld [vmem:[%s1202_s2 + $0x40] sm:$0xff] (!%p165_p9) }
  0x13   : > { %233 = vperm.xlu0 (!%p165_p9), %849, %v211_v7   ;;  %v219_v20 = vld [vmem:[%s1202_s2 + $0x48] sm:$0xff] (!%p165_p9)  ;;  %v203_v22 = vld [vmem:[%s1201_s1 + $0x50] sm:$0xff] (!%p165_p9)  ;;  %v221_v24 = vld [vmem:[%s1202_s2 + $0x58] sm:$0xff] (!%p165_p9) }
  0x14   : > { %243 = vperm.xlu1 (!%p165_p9), %850, %v213_v8   ;;  %v202_v21 = vld [vmem:[%s1201_s1 + $0x48] sm:$0xff] (!%p165_p9)  ;;  %v220_v23 = vld [vmem:[%s1202_s2 + $0x50] sm:$0xff] (!%p165_p9)  ;;  %v204_v25 = vld [vmem:[%s1201_s1 + $0x58] sm:$0xff] (!%p165_p9) }
  0x15   : > { %s190_s29 = scalar_select %p189_p10, %s998_s19, 1  ;;  %v205_v26 = vld [vmem:[%s1201_s1 + $0x60] sm:$0xff]  ;;  %v223_v28 = vld [vmem:[%s1202_s2 + $0x68] sm:$0xff]  ;;  %v207_v30 = vld [vmem:[%s1201_s1 + $0x70] sm:$0xff] }
  0x16   : > { %v222_v27 = vld [vmem:[%s1202_s2 + $0x60] sm:$0xff]  ;;  %v206_v29 = vld [vmem:[%s1201_s1 + $0x68] sm:$0xff]  ;;  %v224_v31 = vld [vmem:[%s1202_s2 + $0x70] sm:$0xff]  ;;  %s951_s19 = smov [#allocation2]  }
  0x17   : > { %s666_s30 = sshll.u32 %s190_s29, 3  ;;  %248 = vperm.xlu0 %849, %v214_v11   ;;  %v225_v32 = vld [vmem:[%s1202_s2 + $0x78] sm:$0xff]  ;;  %s887_s14 = sshll.u32 %s951_s19, 4  ;;  %s888_s14 = int_to_ptr.vmem [resolvable:$false] %s887_s14 }
  0x18   : > { %s192_s7 = scalar_lea.vmem %s1200_s0, %s666_s30  ;;  %253 = vperm.xlu1 %850, %v215_v12   ;;  %v208_v33 = vld [vmem:[%s1201_s1 + $0x78] sm:$0xff]  ;;  %s186_s30 = sand.u32 1, %s937_s16  }
  0x19   : > { %v209_v4 = vld [vmem:[%s192_s7] sm:$0xff]  ;;  %s665_s5 = sshll.u32 %s186_s30, 3  ;;  %s589_s12 = scalar_lea.sflag [#allocation3], %s186_s30 }
  0x1a   : > { %721 = vmatprep.subr.mxu0 %v209_v4  ;;  %s188_s6 = scalar_lea.vmem [#allocation2], %s665_s5  ;;  %s889_s20 = scalar_lea.vmem %s888_s14, 256 }
  0x1b   : > { %722 = vmatpush3.msra.mxu0 %v209_v4  ;;  %258 = vperm.xlu0 %849, %v216_v15   ;;  %s602_s7 = sshll.u32 %s188_s6, 4  ;;  %s1155_s7 = int_to_ptr.vmem [resolvable:$true] %s602_s7 }
  0x1c   : > { %724 = vmatmul.mubr.msk.f32.vlgmr.msra.gmra.mrb[0].mxu0 %vm306_vm0, %v194_v5  ;;  %263 = vperm.xlu1 %850, %v217_v16   ;;  %s883_s13 = scalar_lea.vmem %s1155_s7, 128  ;;  %p890_p0 = scmp.lt.s32.totalorder %s1155_s7, %s888_s14 }
  0x1d   : > { %726 = vmatprep.mubr.msk.f32.mxu0 %vm306_vm0, %v195_v6  ;;  %p884_p11 = scmp.ne.s32.totalorder %s1155_s7, %s883_s13  ;;  %p891_p1 = scmp.lt.s32.totalorder %s889_s20, %s883_s13 }
  0x1f   : > { %268 = vperm.xlu0 %849, %v218_v19   ;;  %p885_p12 = pnand %p884_p11, %p1015_p5  ;;  %p892_p2 = por %p891_p1, %p890_p0 }
  0x20   : > { %727 = vmatmul.mubr.msk.f32.gmra.mrb[2].mxu0 %vm306_vm0, %v196_v9  ;;  %273 = vperm.xlu1 %850, %v219_v20  }
  0x21   : > { %729 = vmatprep.mubr.msk.f32.mxu0 %vm306_vm0, %v197_v10  ;;  %p886_p13 = pneg %p885_p12 }
  0x23   : > { %278 = vperm.xlu0 %849, %v220_v23   ;;  %p893_p3 = pnand %p892_p2, %p886_p13 }
  0x24   : > { %730 = vmatmul.mubr.msk.f32.gmra.mrb[4].mxu0 %vm306_vm0, %v198_v13  ;;  %283 = vperm.xlu1 %850, %v221_v24  }
  0x25   : > { %732 = vmatprep.mubr.msk.f32.mxu0 %vm306_vm0, %v199_v14 }
  0x27   : > { %288 = vperm.xlu0 %849, %v222_v27  }
  0x28   : > { %733 = vmatmul.mubr.msk.f32.gmra.mrb[6].mxu0 %vm306_vm0, %v200_v17  ;;  %293 = vperm.xlu1 %850, %v223_v28  }
  0x29   : > { %735 = vmatprep.mubr.msk.f32.mxu0 %vm306_vm0, %v201_v18 }
  0x2b   : > { %298 = vperm.xlu0 %849, %v224_v31  }
  0x2c   : > { %736 = vmatmul.mubr.msk.f32.gmra.mrb[8].mxu0 %vm306_vm0, %v202_v21  ;;  %303 = vperm.xlu1 %850, %v225_v32  }
  0x2d   : > { %738 = vmatprep.mubr.msk.f32.mxu0 %vm306_vm0, %v203_v22 }
  0x30   : > { %739 = vmatmul.mubr.msk.f32.gmra.mrb[10].mxu0 %vm306_vm0, %v204_v25 }
  0x31   : > { %741 = vmatprep.mubr.msk.f32.mxu0 %vm306_vm0, %v205_v26 }
  0x34   : > { %742 = vmatmul.mubr.msk.f32.gmra.mrb[12].mxu0 %vm306_vm0, %v206_v29 }
  0x35   : > { %744 = vmatprep.mubr.msk.f32.mxu0 %vm306_vm0, %v207_v30 }
  0x38   : > { %745 = vmatmul.mubr.msk.f32.gmra.mrb[14].mxu0 %vm306_vm0, %v208_v33 }
  0x8e   : > { %v229_v37 = vpop.permute.xlu0 %228 }
  0x8f   : > { %v239_v36 = vpop.permute.xlu1 %238 }
  0x92   : > { %v234_v39 = vpop.permute.xlu0 %233 }
  0x93   : > { %v244_v38 = vpop.permute.xlu1 %243 }
  0x96   : > { %v249_v41 = vpop.permute.xlu0 %248 }
  0x97   : > { %v254_v40 = vpop.permute.xlu1 %253 }
  0x9a   : > { %v259_v48 = vpop.permute.xlu0 %258 }
  0x9b   : > { %v264_v46 = vpop.permute.xlu1 %263 }
  0x9e   : > { %v269_v57 = vpop.permute.xlu0 %268 }
  0x9f   : > { %v274_v55 = vpop.permute.xlu1 %273 }
  0xa2   : > { %v279_v4 = vpop.permute.xlu0 %278 }
  0xa3   : > { %v284_v1 = vpop.permute.xlu1 %283 }
  0xa6   : > { %v289_v17 = vpop.permute.xlu0 %288 }
  0xa7   : > { %v294_v15 = vpop.permute.xlu1 %293 }
  0xaa   : > { %v299_v29 = vpop.permute.xlu0 %298 }
  0xab   : > { %v304_v26 = vpop.permute.xlu1 %303 }
  0xef   : > { %v725_v42 = vpop.f32.mrb[0].mxu0 }
  0xf0   : > { %v427_v43 = vadd.f32 %v725_v42, %v234_v39  ;;  %v421_v44 = vpop.f32.mrb[1].mxu0 }
  0xf1   : > { %v422_v45 = vadd.f32 %v421_v44, %v229_v37 }
  0xf2   : > { %851 = vtanh.f32 %v427_v43 }
  0xf3   : > { %853 = vtanh.f32 %v422_v45  ;;  %v728_v47 = vpop.f32.mrb[2].mxu0  ;;  %v516_v45 = vld [vmem:[%s1203_s3] sm:$0xff] }
  0xf4   : > { %v437_v49 = vadd.f32 %v728_v47, %v244_v38  ;;  %v431_v50 = vpop.f32.mrb[3].mxu0 }
  0xf5   : > { %v432_v51 = vadd.f32 %v431_v50, %v239_v36 }
  0xf6   : > { %855 = vtanh.f32 %v437_v49 }
  0xf7   : > { %857 = vtanh.f32 %v432_v51  ;;  %v731_v52 = vpop.f32.mrb[4].mxu0 }
  0xf8   : > { %v447_v53 = vadd.f32 %v731_v52, %v254_v40  ;;  %v441_v54 = vpop.f32.mrb[5].mxu0 }
  0xf9   : > { %v442_v56 = vadd.f32 %v441_v54, %v249_v41 }
  0xfa   : > { %859 = vtanh.f32 %v447_v53 }
  0xfb   : > { %861 = vtanh.f32 %v442_v56  ;;  %v734_v58 = vpop.f32.mrb[6].mxu0 }
  0xfc   : > { %v852_v59 = vpop.eup %851  ;;  %v457_v60 = vadd.f32 %v734_v58, %v264_v46  ;;  %v451_v61 = vpop.f32.mrb[7].mxu0 }
  0xfd   : > { %v854_v62 = vpop.eup %853  ;;  %v452_v63 = vadd.f32 %v451_v61, %v259_v48 }
  0xfe   : > { %863 = vtanh.f32 %v457_v60  ;;  %v783_v0 = vpack.c.bf16 %v852_v59, %v854_v62 }
  0xff   : > { %865 = vtanh.f32 %v452_v63  ;;  %v737_v2 = vpop.f32.mrb[8].mxu0 }
 0x100   : > { %v856_v3 = vpop.eup %855  ;;  %v467_v5 = vadd.f32 %v737_v2, %v274_v55  ;;  %v461_v6 = vpop.f32.mrb[9].mxu0  ;;  %784 = vmatpush3.bf16.msra.mxu1 %v783_v0 }
 0x101   : > { %v858_v7 = vpop.eup %857  ;;  %v462_v8 = vadd.f32 %v461_v6, %v269_v57  ;;  %785 = vmatprep.subr.bf16.mxu1 %v948_v34 }
 0x102   : > { %867 = vtanh.f32 %v467_v5  ;;  %v786_v9 = vpack.c.bf16 %v856_v3, %v858_v7 }
 0x103   : > { %869 = vtanh.f32 %v462_v8  ;;  %v740_v10 = vpop.f32.mrb[10].mxu0 }
 0x104   : > { %v860_v11 = vpop.eup %859  ;;  %v477_v12 = vadd.f32 %v740_v10, %v284_v1  ;;  %v471_v13 = vpop.f32.mrb[11].mxu0  ;;  %787 = vmatpush3.bf16.msra.mxu1 %v786_v9 }
 0x105   : > { %v862_v14 = vpop.eup %861  ;;  %v472_v16 = vadd.f32 %v471_v13, %v279_v4  ;;  %788 = vmatprep.subr.bf16.mxu1 %v948_v34 }
 0x106   : > { %871 = vtanh.f32 %v477_v12  ;;  %v789_v18 = vpack.c.bf16 %v860_v11, %v862_v14 }
 0x107   : > { %873 = vtanh.f32 %v472_v16  ;;  %v743_v19 = vpop.f32.mrb[12].mxu0 }
 0x108   : > { %v864_v20 = vpop.eup %863  ;;  %v487_v21 = vadd.f32 %v743_v19, %v294_v15  ;;  %v481_v22 = vpop.f32.mrb[13].mxu0  ;;  %790 = vmatpush3.bf16.msra.mxu1 %v789_v18 }
 0x109   : > { %v866_v23 = vpop.eup %865  ;;  %v482_v24 = vadd.f32 %v481_v22, %v289_v17  ;;  %791 = vmatprep.subr.bf16.mxu1 %v948_v34 }
 0x10a   : > { %875 = vtanh.f32 %v487_v21  ;;  %v792_v25 = vpack.c.bf16 %v864_v20, %v866_v23 }
 0x10b   : > { %877 = vtanh.f32 %v482_v24  ;;  %v746_v27 = vpop.f32.mrb[14].mxu0 }
 0x10c   : > { %v868_v28 = vpop.eup %867  ;;  %v497_v30 = vadd.f32 %v746_v27, %v304_v26  ;;  %v491_v31 = vpop.f32.mrb[15].mxu0  ;;  %793 = vmatpush3.bf16.msra.mxu1 %v792_v25 }
 0x10d   : > { %v870_v32 = vpop.eup %869  ;;  %v492_v33 = vadd.f32 %v491_v31, %v299_v29  ;;  %794 = vmatprep.subr.bf16.mxu1 %v948_v34 }
 0x10e   : > { %879 = vtanh.f32 %v497_v30  ;;  %v795_v35 = vpack.c.bf16 %v868_v28, %v870_v32 }
 0x10f   : > { %881 = vtanh.f32 %v492_v33 }
 0x110   : > { %v872_v36 = vpop.eup %871  ;;  %796 = vmatpush3.bf16.msra.mxu1 %v795_v35 }
 0x111   : > { %v874_v37 = vpop.eup %873  ;;  %797 = vmatprep.subr.bf16.mxu1 %v948_v34 }
 0x112   : > { %v798_v38 = vpack.c.bf16 %v872_v36, %v874_v37 }
 0x114   : > { %v876_v39 = vpop.eup %875  ;;  %799 = vmatpush3.bf16.msra.mxu1 %v798_v38 }
 0x115   : > { %v878_v40 = vpop.eup %877  ;;  %800 = vmatprep.subr.bf16.mxu1 %v948_v34 }
 0x116   : > { %v801_v41 = vpack.c.bf16 %v876_v39, %v878_v40 }
 0x118   : > { %v880_v42 = vpop.eup %879  ;;  %802 = vmatpush3.bf16.msra.mxu1 %v801_v41 }
 0x119   : > { %v882_v43 = vpop.eup %881  ;;  %803 = vmatprep.subr.bf16.mxu1 %v948_v34 }
 0x11a   : > { %v804_v44 = vpack.c.bf16 %v880_v42, %v882_v43 }
 0x11c   : > { %805 = vmatpush3.bf16.msra.mxu1 %v804_v44 }
 0x11f   : > { %780 = vmatmul.mubr.f32.vlgmr.msra.gmra.mrb[0].mxu1 %v516_v45 }
 0x1f2   : > { %v583_v34 = vpop.f32.mrb[0].mxu1 }
 0x1f3   : > { %587 = vst [vmem:[%s188_s6] sm:$0xff] %v583_v34  ;;  %v781_v46 = vpop.f32.mrb[1].mxu1 }
 0x1f4   : > { %896 = shalt.err (!%p893_p3)
}
 0x1f5   : > { %s897_s22 = scalar_lea.hbm %s1160_s11, 128  ;;  %s901_s28 = scalar_lea.hbm %s1204_s4, 256 }
 0x1f6   : > { %p898_p4 = scmp.ne.s32.totalorder %s1160_s11, %s897_s22  ;;  %p902_p9 = scmp.lt.u32.totalorder %s1160_s11, %s1204_s4 }
 0x1f7   : > { %p903_p10 = scmp.lt.u32.totalorder %s901_s28, %s897_s22  ;;  %p905_p12 = scmp.lt.u32.totalorder %s897_s22, %s1160_s11 }
 0x1f8   : > { %p899_p7 = pnand %p898_p4, %p1015_p5 }
 0x1f9   : > { %p904_p11 = por %p903_p10, %p902_p9 }
 0x1fa   : > { %p900_p8 = pneg %p899_p7 }
 0x1fb   : > { %p906_p13 = por %p905_p12, %p904_p11 }
 0x1fd   : > { %p907_p0 = pnand %p906_p13, %p900_p8 }
 0x1ff   : > { %910 = shalt.err (!%p907_p0)
}
 0x200   : > { %806 = dma.vmem_to_hbm [thread:$0]  (%p1015_p5), %s1155_s7, 128, %s1160_s11, %s589_s12  }
 0x201 PF: > { %p812_p1 = scmp.ge.s32.totalorder %s945_s18, 2  ;;  %s614_s5 = sand.u32 1, %s933_s15  }
 0x202   : > { %s615_s6 = scalar_lea.sflag [#allocation3], %s614_s5 }
 0x203   : > { %p809_p2 = pnand %p812_p1, %p1019_p6 }
 0x205   : > { %928 = dma.done.wait (!%p809_p2), %s615_s6, 128  }
 0x206   : > { %930 = vsyncadd (!%p809_p2), %s615_s6, 4294967168  ;;  %p14_p3 = scmp.ge.s32.totalorder %s1002_s21, 4   ;;  %s1207_s15 = smov %s937_s16 }
 0x207   : > { %s1208_s16 = smov %s941_s17  ;;  %s1209_s17 = smov %s1013_s24 }
 0x208   : > { %s1210_s18 = smov %s1002_s21  ;;  %16 = sbr.rel (!%p14_p3) target bundleno = 3 (0x3), region = 71 }
 0x20f   :  { %620 = vsyncpa [#allocation3], 1 }
 0x210   :  { %622 = vsyncpa [#allocation3 + $0x1], 1 }

</bundles_post_ra>
